<compile_context>
chip_gen: v6e
topology: v6e:2x2x1
jax: 0.10.0
libtpu: 0.0.40
codegen_flags: <defaults>
</compile_context>

<pallas_src>
import jax
import jax.numpy as jnp
from jax import lax
from jax.experimental import pallas as pl
from jax.experimental.pallas import tpu as pltpu


def _vmem_capacity_bytes():
    """Generation-aware VMEM capacity; conservative fallback (v7x per-TC)."""
    try:
        info = pltpu.get_tpu_info()
        cap = getattr(info, "vmem_capacity_bytes", None)
        if cap:
            return int(cap)
    except Exception:
        pass
    return 64 * 1024 * 1024


def depthwise_separable_conv(x_nchw, dw_w, dw_b, pw_w, pw_b, *, mxu_dtype=None):
    """x_nchw: (N, C, H, W); dw_w: (C*K, 1, 3, 3); dw_b: (C*K,);
    pw_w: (Cout, C*K, 1, 1); pw_b: (Cout,). Returns (N, Cout, H, W)."""
    N, C, H, W = x_nchw.shape
    CK = dw_w.shape[0]
    K = CK // C
    Cout = pw_w.shape[0]
    Wp = W + 2                                   # padded width
    op_dtype = jnp.dtype(mxu_dtype) if mxu_dtype is not None else jnp.dtype(x_nchw.dtype)
    out_dtype = jnp.dtype(x_nchw.dtype)

    # ---- pad Cout up to a sublane-dense multiple (8 f32 / 16 bf16) ----------
    sub = max(8, 32 // op_dtype.itemsize)
    Cp = -(-Cout // sub) * sub

    # ---- fuse depthwise into pointwise (loop-invariant, done once in XLA) ---
    dw = dw_w.reshape(C, K, 3, 3).astype(jnp.float32)            # [c, k, dy, dx]
    pw = pw_w.reshape(Cout, C, K).astype(jnp.float32)            # [co, c, k]
    wf = jnp.einsum('ckyx,ock->yxco', dw, pw).reshape(9 * C, Cout)   # tap-major rows
    wf = jnp.pad(wf, ((0, 0), (0, Cp - Cout)))
    w_stack = wf.T.astype(op_dtype)                              # (Cp, 9C)
    b_fused = (pw_b.astype(jnp.float32)
               + pw_w.reshape(Cout, CK).astype(jnp.float32) @ dw_b.astype(jnp.float32))
    b_fused = jnp.pad(b_fused, (0, Cp - Cout)).reshape(Cp, 1)    # (Cp, 1), f32

    # ---- row-block: LARGEST divisor of H whose working set fits the budget --
    isz = op_dtype.itemsize
    osz = out_dtype.itemsize

    def step_bytes(th):
        lw = (th + 2) * Wp + 2
        l = th * Wp
        return (2 * C * lw * isz              # double-buffered input block
                + 2 * Cp * l * osz            # double-buffered output block
                + 9 * C * l * isz             # im2col scratch (single copy)
                + 2 * Cp * 9 * C * isz        # weights (double-buffered, constant)
                + 4 * Cp + (64 << 10))        # bias + headroom

    vmem_cap = _vmem_capacity_bytes()
    budget = int(vmem_cap * 0.65)
    TH = 1
    for d in range(H, 0, -1):
        if H % d == 0 and step_bytes(d) <= budget:
            TH = d
            break
    HB = H // TH                                  # row blocks per image
    L = TH * Wp                                   # output lanes per block
    Lw = (TH + 2) * Wp + 2                        # input lanes per block (2-row halo)
    OFFS = tuple(dy * Wp + dx for dy in range(3) for dx in range(3))

    # ---- zero 'same' pad, flatten spatial ------------------------------------
    xpad = jnp.pad(x_nchw, ((0, 0), (0, 0), (1, 1), (1, 1)))          # (N,C,H+2,Wp)
    xpf = jnp.pad(xpad.reshape(N, C, (H + 2) * Wp), ((0, 0), (0, 0), (0, 2)))
    if HB == 1:
        # No halo duplication / no extra HBM pass: the block IS the padded image.
        xblk = xpf[:, None].astype(op_dtype)                           # (N,1,C,Lw)
    else:
        # Large images only: halo tax is 2/(TH+2) with TH chosen as large as fits.
        xblk = jnp.stack([xpf[:, :, rb * L: rb * L + Lw] for rb in range(HB)],
                         axis=1).astype(op_dtype)                      # (N,HB,C,Lw)

    def kernel(x_ref, w_ref, b_ref, out_ref, p_scr):
        # x_ref  : (1, 1, C, Lw)   halo'd, flattened row block (NCHW order)
        # w_ref  : (Cp, 9*C)       fused depthwise+pointwise weights
        # b_ref  : (Cp, 1)         fused bias (f32)
        # out_ref: (1, 1, Cp, L)   channels on sublanes, spatial on lanes
        # p_scr  : (9*C, L)        stacked shifted taps (VMEM scratch)
        for t, off in enumerate(OFFS):             # 9 static lane windows
            p_scr[pl.ds(t * C, C), :] = x_ref[0, 0, :, pl.ds(off, L)]
        acc = jnp.dot(w_ref[...], p_scr[...],      # one deep (Cp,9C)x(9C,L) MXU matmul
                      preferred_element_type=jnp.float32)
        out_ref[0, 0] = (acc + b_ref[...]).astype(out_ref.dtype)

    cost = pl.CostEstimate(
        flops=2 * N * HB * L * (9 * C) * Cp,
        transcendentals=0,
        bytes_accessed=N * HB * (C * Lw * isz + Cp * L * osz) + 9 * C * Cp * isz,
    )
    vmem_limit = int(min(max(4 << 20, step_bytes(TH) + (2 << 20)),
                         int(vmem_cap * 0.9)))

    out = pl.pallas_call(
        kernel,
        out_shape=jax.ShapeDtypeStruct((N, HB, Cp, L), out_dtype),
        grid_spec=pltpu.PrefetchScalarGridSpec(
            num_scalar_prefetch=0,
            grid=(N, HB),
            in_specs=[
                pl.BlockSpec((1, 1, C, Lw), lambda n, rb: (n, rb, 0, 0)),
                pl.BlockSpec((Cp, 9 * C), lambda n, rb: (0, 0)),
                pl.BlockSpec((Cp, 1), lambda n, rb: (0, 0)),
            ],
            out_specs=pl.BlockSpec((1, 1, Cp, L), lambda n, rb: (n, rb, 0, 0)),
            scratch_shapes=[pltpu.VMEM((9 * C, L), op_dtype)],
        ),
        compiler_params=pltpu.CompilerParams(
            dimension_semantics=("parallel", "parallel"),
            vmem_limit_bytes=vmem_limit,
        ),
        cost_estimate=cost,
    )(xblk, w_stack, b_fused)

    # (N, HB, Cp, TH, Wp): strip pad channels + pad columns, regroup rows -> NCHW.
    # With HB == 1 (common case) the transpose only moves a size-1 axis (bitcast).
    out = out.reshape(N, HB, Cp, TH, Wp)[:, :, :Cout, :, :W]
    return jnp.transpose(out, (0, 2, 1, 3, 4)).reshape(N, Cout, H, W)


def _reference(x, dw_w, dw_b, pw_w, pw_b):
    C = x.shape[1]
    y = lax.conv_general_dilated(x, dw_w, (1, 1), 'SAME',
                                 feature_group_count=C,
                                 dimension_numbers=('NCHW', 'OIHW', 'NCHW'))
    y = y + dw_b[None, :, None, None]
    z = lax.conv_general_dilated(y, pw_w, (1, 1), 'SAME',
                                 dimension_numbers=('NCHW', 'OIHW', 'NCHW'))
    z = z + pw_b[None, :, None, None]
    return z


if __name__ == "__main__":
    N, C, H, W = 2, 4, 16, 16
    K = 1                      # kernels_per_layer
    Cout = 8
    CK = C * K

    key = jax.random.PRNGKey(0)
    kx, k1, k2, k3, k4 = jax.random.split(key, 5)

    x = jax.random.normal(kx, (N, C, H, W), jnp.float32)
    dw_w = jax.random.normal(k1, (CK, 1, 3, 3), jnp.float32) * 0.1
    dw_b = jax.random.normal(k2, (CK,), jnp.float32) * 0.1
    pw_w = jax.random.normal(k3, (Cout, CK, 1, 1), jnp.float32) * 0.1
    pw_b = jax.random.normal(k4, (Cout,), jnp.float32) * 0.1

    out = depthwise_separable_conv(x, dw_w, dw_b, pw_w, pw_b)
    out = jax.block_until_ready(out)

    ref = _reference(x, dw_w, dw_b, pw_w, pw_b)
    assert out.shape == (N, Cout, H, W), out.shape
    assert jnp.allclose(out, ref, atol=1e-4, rtol=1e-4), "mismatch vs reference"

    print("KERNEL_OK")
</pallas_src>

<mosaic_0001>
module attributes {stable_mosaic.version = 11 : i64} {
  func.func @kernel(%arg0: i32, %arg1: i32, %arg2: memref<1x1x4x326xf32, #tpu.memory_space<vmem>>, %arg3: memref<8x36xf32, #tpu.memory_space<vmem>>, %arg4: memref<8x1xf32, #tpu.memory_space<vmem>>, %arg5: memref<1x1x8x288xf32, #tpu.memory_space<vmem>>, %arg6: memref<36x288xf32, #tpu.memory_space<vmem>>) attributes {dimension_semantics = [#tpu.dimension_semantics<parallel>, #tpu.dimension_semantics<parallel>], iteration_bounds = array<i64: 2, 1>, scalar_prefetch = 0 : i64, scratch_operands = 1 : i64, tpu.core_type = #tpu.core_type<tc>, window_params = [{transform_indices = @transform_0, window_bounds = array<i64: 1, 1, 4, 326>}, {pipeline_mode = #tpu.pipeline_mode<synchronous>, transform_indices = @transform_1, window_bounds = array<i64: 8, 36>}, {pipeline_mode = #tpu.pipeline_mode<synchronous>, transform_indices = @transform_2, window_bounds = array<i64: 8, 1>}, {transform_indices = @transform_3, window_bounds = array<i64: 1, 1, 8, 288>}]} {
    %c0 = arith.constant 0 : index
    %c0_0 = arith.constant 0 : index
    %c0_1 = arith.constant 0 : index
    %c0_2 = arith.constant 0 : index
    %0 = vector.load %arg2[%c0, %c0_0, %c0_1, %c0_2] : memref<1x1x4x326xf32, #tpu.memory_space<vmem>>, vector<1x1x4x288xf32>
    %1 = vector.shape_cast %0 : vector<1x1x4x288xf32> to vector<4x288xf32>
    %c0_3 = arith.constant 0 : index
    %c0_4 = arith.constant 0 : index
    %2 = vector.load %arg6[%c0_3, %c0_4] : memref<36x288xf32, #tpu.memory_space<vmem>>, vector<4x288xf32>
    tpu.vector_store %arg6[%c0_3, %c0_4], %1 {strides = array<i32>} : memref<36x288xf32, #tpu.memory_space<vmem>>, vector<4x288xf32>,
    %c0_5 = arith.constant 0 : index
    %c0_6 = arith.constant 0 : index
    %c0_7 = arith.constant 0 : index
    %c1 = arith.constant 1 : index
    %3 = vector.load %arg2[%c0_5, %c0_6, %c0_7, %c1] : memref<1x1x4x326xf32, #tpu.memory_space<vmem>>, vector<1x1x4x288xf32>
    %4 = vector.shape_cast %3 : vector<1x1x4x288xf32> to vector<4x288xf32>
    %c4 = arith.constant 4 : index
    %c0_8 = arith.constant 0 : index
    %5 = vector.load %arg6[%c4, %c0_8] : memref<36x288xf32, #tpu.memory_space<vmem>>, vector<4x288xf32>
    tpu.vector_store %arg6[%c4, %c0_8], %4 {strides = array<i32>} : memref<36x288xf32, #tpu.memory_space<vmem>>, vector<4x288xf32>,
    %c0_9 = arith.constant 0 : index
    %c0_10 = arith.constant 0 : index
    %c0_11 = arith.constant 0 : index
    %c2 = arith.constant 2 : index
    %6 = vector.load %arg2[%c0_9, %c0_10, %c0_11, %c2] : memref<1x1x4x326xf32, #tpu.memory_space<vmem>>, vector<1x1x4x288xf32>
    %7 = vector.shape_cast %6 : vector<1x1x4x288xf32> to vector<4x288xf32>
    %c8 = arith.constant 8 : index
    %c0_12 = arith.constant 0 : index
    %8 = vector.load %arg6[%c8, %c0_12] : memref<36x288xf32, #tpu.memory_space<vmem>>, vector<4x288xf32>
    tpu.vector_store %arg6[%c8, %c0_12], %7 {strides = array<i32>} : memref<36x288xf32, #tpu.memory_space<vmem>>, vector<4x288xf32>,
    %c0_13 = arith.constant 0 : index
    %c0_14 = arith.constant 0 : index
    %c0_15 = arith.constant 0 : index
    %c18 = arith.constant 18 : index
    %9 = vector.load %arg2[%c0_13, %c0_14, %c0_15, %c18] : memref<1x1x4x326xf32, #tpu.memory_space<vmem>>, vector<1x1x4x288xf32>
    %10 = vector.shape_cast %9 : vector<1x1x4x288xf32> to vector<4x288xf32>
    %c12 = arith.constant 12 : index
    %c0_16 = arith.constant 0 : index
    %11 = vector.load %arg6[%c12, %c0_16] : memref<36x288xf32, #tpu.memory_space<vmem>>, vector<4x288xf32>
    tpu.vector_store %arg6[%c12, %c0_16], %10 {strides = array<i32>} : memref<36x288xf32, #tpu.memory_space<vmem>>, vector<4x288xf32>,
    %c0_17 = arith.constant 0 : index
    %c0_18 = arith.constant 0 : index
    %c0_19 = arith.constant 0 : index
    %c19 = arith.constant 19 : index
    %12 = vector.load %arg2[%c0_17, %c0_18, %c0_19, %c19] : memref<1x1x4x326xf32, #tpu.memory_space<vmem>>, vector<1x1x4x288xf32>
    %13 = vector.shape_cast %12 : vector<1x1x4x288xf32> to vector<4x288xf32>
    %c16 = arith.constant 16 : index
    %c0_20 = arith.constant 0 : index
    %14 = vector.load %arg6[%c16, %c0_20] : memref<36x288xf32, #tpu.memory_space<vmem>>, vector<4x288xf32>
    tpu.vector_store %arg6[%c16, %c0_20], %13 {strides = array<i32>} : memref<36x288xf32, #tpu.memory_space<vmem>>, vector<4x288xf32>,
    %c0_21 = arith.constant 0 : index
    %c0_22 = arith.constant 0 : index
    %c0_23 = arith.constant 0 : index
    %c20 = arith.constant 20 : index
    %15 = vector.load %arg2[%c0_21, %c0_22, %c0_23, %c20] : memref<1x1x4x326xf32, #tpu.memory_space<vmem>>, vector<1x1x4x288xf32>
    %16 = vector.shape_cast %15 : vector<1x1x4x288xf32> to vector<4x288xf32>
    %c20_24 = arith.constant 20 : index
    %c0_25 = arith.constant 0 : index
    %17 = vector.load %arg6[%c20_24, %c0_25] : memref<36x288xf32, #tpu.memory_space<vmem>>, vector<4x288xf32>
    tpu.vector_store %arg6[%c20_24, %c0_25], %16 {strides = array<i32>} : memref<36x288xf32, #tpu.memory_space<vmem>>, vector<4x288xf32>,
    %c0_26 = arith.constant 0 : index
    %c0_27 = arith.constant 0 : index
    %c0_28 = arith.constant 0 : index
    %c36 = arith.constant 36 : index
    %18 = vector.load %arg2[%c0_26, %c0_27, %c0_28, %c36] : memref<1x1x4x326xf32, #tpu.memory_space<vmem>>, vector<1x1x4x288xf32>
    %19 = vector.shape_cast %18 : vector<1x1x4x288xf32> to vector<4x288xf32>
    %c24 = arith.constant 24 : index
    %c0_29 = arith.constant 0 : index
    %20 = vector.load %arg6[%c24, %c0_29] : memref<36x288xf32, #tpu.memory_space<vmem>>, vector<4x288xf32>
    tpu.vector_store %arg6[%c24, %c0_29], %19 {strides = array<i32>} : memref<36x288xf32, #tpu.memory_space<vmem>>, vector<4x288xf32>,
    %c0_30 = arith.constant 0 : index
    %c0_31 = arith.constant 0 : index
    %c0_32 = arith.constant 0 : index
    %c37 = arith.constant 37 : index
    %21 = vector.load %arg2[%c0_30, %c0_31, %c0_32, %c37] : memref<1x1x4x326xf32, #tpu.memory_space<vmem>>, vector<1x1x4x288xf32>
    %22 = vector.shape_cast %21 : vector<1x1x4x288xf32> to vector<4x288xf32>
    %c28 = arith.constant 28 : index
    %c0_33 = arith.constant 0 : index
    %23 = vector.load %arg6[%c28, %c0_33] : memref<36x288xf32, #tpu.memory_space<vmem>>, vector<4x288xf32>
    tpu.vector_store %arg6[%c28, %c0_33], %22 {strides = array<i32>} : memref<36x288xf32, #tpu.memory_space<vmem>>, vector<4x288xf32>,
    %c0_34 = arith.constant 0 : index
    %c0_35 = arith.constant 0 : index
    %c0_36 = arith.constant 0 : index
    %c38 = arith.constant 38 : index
    %24 = vector.load %arg2[%c0_34, %c0_35, %c0_36, %c38] : memref<1x1x4x326xf32, #tpu.memory_space<vmem>>, vector<1x1x4x288xf32>
    %25 = vector.shape_cast %24 : vector<1x1x4x288xf32> to vector<4x288xf32>
    %c32 = arith.constant 32 : index
    %c0_37 = arith.constant 0 : index
    %26 = vector.load %arg6[%c32, %c0_37] : memref<36x288xf32, #tpu.memory_space<vmem>>, vector<4x288xf32>
    tpu.vector_store %arg6[%c32, %c0_37], %25 {strides = array<i32>} : memref<36x288xf32, #tpu.memory_space<vmem>>, vector<4x288xf32>,
    %c0_38 = arith.constant 0 : index
    %c0_39 = arith.constant 0 : index
    %27 = vector.load %arg3[%c0_38, %c0_39] : memref<8x36xf32, #tpu.memory_space<vmem>>, vector<8x36xf32>
    %c0_40 = arith.constant 0 : index
    %c0_41 = arith.constant 0 : index
    %28 = vector.load %arg6[%c0_40, %c0_41] : memref<36x288xf32, #tpu.memory_space<vmem>>, vector<36x288xf32>
    %cst = arith.constant dense<0.000000e+00> : vector<8x288xf32>
    %29 = tpu.matmul %27, %28, %cst {dimension_numbers = #tpu.dot_dimension_numbers<[1], [0], [0], [1], [0, 0, 1, 1], [], []>} : vector<8x36xf32>, vector<36x288xf32>, vector<8x288xf32> -> vector<8x288xf32>
    %c0_42 = arith.constant 0 : index
    %c0_43 = arith.constant 0 : index
    %30 = vector.load %arg4[%c0_42, %c0_43] : memref<8x1xf32, #tpu.memory_space<vmem>>, vector<8x1xf32>
    %31 = vector.broadcast %30 : vector<8x1xf32> to vector<8x288xf32>
    %32 = arith.addf %29, %31 : vector<8x288xf32>
    %c0_44 = arith.constant 0 : index
    %c0_45 = arith.constant 0 : index
    %c0_46 = arith.constant 0 : index
    %c0_47 = arith.constant 0 : index
    %33 = vector.load %arg5[%c0_44, %c0_45, %c0_46, %c0_47] : memref<1x1x8x288xf32, #tpu.memory_space<vmem>>, vector<1x1x8x288xf32>
    %34 = vector.shape_cast %33 : vector<1x1x8x288xf32> to vector<8x288xf32>
    %35 = vector.shape_cast %32 : vector<8x288xf32> to vector<1x1x8x288xf32>
    tpu.vector_store %arg5[%c0_44, %c0_45, %c0_46, %c0_47], %35 {strides = array<i32>} : memref<1x1x8x288xf32, #tpu.memory_space<vmem>>, vector<1x1x8x288xf32>,
    return
  }
  func.func @transform_0(%arg0: i32, %arg1: i32) -> (i32, i32, i32, i32) {
    %c0_i32 = arith.constant 0 : i32
    %c0_i32_0 = arith.constant 0 : i32
    %c0_i32_1 = arith.constant 0 : i32
    return %arg0, %arg1, %c0_i32, %c0_i32_0 : i32, i32, i32, i32
  }
  func.func @transform_1(%arg0: i32, %arg1: i32) -> (i32, i32) {
    %c0_i32 = arith.constant 0 : i32
    %c0_i32_0 = arith.constant 0 : i32
    %c0_i32_1 = arith.constant 0 : i32
    return %c0_i32, %c0_i32_0 : i32, i32
  }
  func.func @transform_2(%arg0: i32, %arg1: i32) -> (i32, i32) {
    %c0_i32 = arith.constant 0 : i32
    %c0_i32_0 = arith.constant 0 : i32
    %c0_i32_1 = arith.constant 0 : i32
    return %c0_i32, %c0_i32_0 : i32, i32
  }
  func.func @transform_3(%arg0: i32, %arg1: i32) -> (i32, i32, i32, i32) {
    %c0_i32 = arith.constant 0 : i32
    %c0_i32_0 = arith.constant 0 : i32
    %c0_i32_1 = arith.constant 0 : i32
    return %arg0, %arg1, %c0_i32, %c0_i32_0 : i32, i32, i32, i32
  }
}

</mosaic_0001>

<bundles_post_ra>
// kernel: tpu_custom_call.1
= control target key start
LH: loop header
LB: loop body
LE: loop exit
PB: predicated region body
PF: predicated region fallthrough
CT: control target
= control target key end

     0   :  { %8 = vsyncpa [#allocation4], 0  ;;  %s1098_s0 = inlined_call_operand.hbm [shape: f32[2,1,4,326], index: 0, kind: input, shape index: {}]   ;;  %s1099_s1 = inlined_call_operand.vmem [shape: f32[8,36], index: 1, kind: input, shape index: {}]   ;;  %s1100_s2 = inlined_call_operand.vmem [shape: f32[8,1], index: 2, kind: input, shape index: {}]   ;;  %s1101_s3 = inlined_call_operand.hbm [shape: f32[2,1,8,288], index: 3, kind: output, shape index: {}]  }
   0x1   :  { %10 = vsyncpa [#allocation4 + $0x1], 0 }
   0x2   :  { %11 = vsyncpa [#allocation5], 0 }
   0x3   :  { %13 = vsyncpa [#allocation5 + $0x1], 0  ;;  %s922_s12 = smov 0   ;;  %s924_s13 = smov 0  }
   0x4   :  { %s926_s14 = smov 0   ;;  %s928_s15 = smov 0  }
   0x5   :  { %s930_s16 = smov 0   ;;  %s932_s17 = smov 0  }
   0x6 LB: > { %s661_s18 = sadd.s32 4294967295, %s887_s17   ;;  %s662_s19 = sadd.s32 4294967294, %s887_s17   ;;  %s887_s17 = sphi %s932_s17, %s19_s17   ;;  %s883_s16 = sphi %s930_s16, %s1113_s16   ;;  %s879_s15 = sphi %s928_s15, %s1112_s15   ;;  %s875_s14 = sphi %s926_s14, %s1111_s14   ;;  %s871_s13 = sphi %s924_s13, %s1110_s13   ;;  %s867_s12 = sphi %s922_s12, %s1109_s12  }
   0x7   : > { %s31_s20 = sadd.s32 1, %s883_s16  ;;  %s40_s21 = sadd.s32 1, %s875_s14 }
   0x8   : > { %p33_p0 = scmp.ge.s32.totalorder %s31_s20, 2  ;;  %p47_p1 = scmp.ne.s32.totalorder %s875_s14, %s871_s13 }
   0x9   : > { %p48_p2 = scmp.eq.s32.totalorder %s887_s17, 0  ;;  %p53_p3 = scmp.ne.s32.totalorder %s871_s13, %s867_s12 }
   0xa   : > { %s1115_s20 = smov (%p33_p0, %s31_s20), 0  ;;  %p54_p5 = scmp.eq.s32.totalorder %s661_s18, 0 }
   0xb   : > { %p963_p4 = por %p48_p2, %p47_p1  ;;  %s35_s23 = ssub.s32 %s883_s16, %s1115_s20 }
   0xc   : > { %p121_p6 = scmp.eq.s32.totalorder %s661_s18, 1  ;;  %p38_p7 = scmp.eq.s32.totalorder %s35_s23, 0 }
   0xd   : > { %p969_p8 = por %p54_p5, %p53_p3  ;;  %p127_p10 = scmp.eq.s32.totalorder %s662_s19, 1 }
   0xe   : > { %p973_p9 = por %p121_p6, %p47_p1  ;;  %p711_p13 = scmp.lt.s32.totalorder %s887_s17, 2 }
   0xf   : > { %s978_s26 = scalar_select %p38_p7, %s875_s14, %s40_s21  }
  0x10   : > { %p980_p11 = por %p127_p10, %p53_p3  ;;  %s153_s28 = sand.u32 1, %s875_s14  }
  0x11   : > { %s694_s29 = smul.u32 12, %s153_s28  ;;  %p990_p0 = pnand %p711_p13, %p963_p4 }
  0x12   : > { %s1105_s27 = scalar_select %p980_p11, 1, 0 }
  0x13   : > { %s695_s30 = smul.u32 192, %s883_s16  ;;  %p666_p1 = scmp.ge.s32.totalorder %s887_s17, 1 }
  0x14   : > { %s157_s8 = scalar_lea.vmem [#allocation3], %s694_s29  ;;  %s154_s10 = scalar_lea.sflag [#allocation4], %s153_s28 }
  0x15   : > { %s165_s7 = scalar_lea.hbm %s1098_s0, %s695_s30  ;;  %s167_s9 = sshll.u32 %s157_s8, 4  ;;  %s168_s9 = int_to_ptr.vmem [resolvable:$true] %s167_s9 }
  0x16   : > { %p781_p2 = pneg %p990_p0  ;;  %s792_s11 = scalar_lea.vmem %s168_s9, 192 }
  0x17   : > { %p793_p3 = scmp.ne.s32.totalorder %s168_s9, %s792_s11  ;;  %s889_s18 = smov [#allocation3]  }
  0x18   : > { %s797_s19 = sshll.u32 %s889_s18, 4  ;;  %s798_s19 = int_to_ptr.vmem [resolvable:$false] %s797_s19 }
  0x19   : > { %p795_p5 = pnand %p793_p3, %p781_p2  ;;  %s799_s21 = scalar_lea.vmem %s798_s19, 384 }
  0x1a   : > { %p800_p4 = scmp.lt.s32.totalorder %s168_s9, %s798_s19  ;;  %p801_p7 = scmp.lt.s32.totalorder %s799_s21, %s792_s11 }
  0x1b   : > { %p796_p6 = pneg %p795_p5 }
  0x1c   : > { %p802_p10 = por %p801_p7, %p800_p4 }
  0x1e   : > { %p803_p13 = pnand %p802_p10, %p796_p6 }
  0x20   : > { %806 = shalt.err (!%p803_p13)
}
  0x21   : > { %706 = dma.hbm_to_vmem [thread:$0]  (!%p990_p0), %s165_s7, 192, %s168_s9, %s154_s10  }
  0x22   : > { %p172_p12 = scmp.lt.s32.totalorder %s887_s17, 3 }
  0x24   : > { %p173_p11 = pnand %p666_p1, %p172_p12 }
  0x25   : > { %s1006_s22 = sand.u32 (!%p173_p11), 1, %s871_s13  }
  0x26   : > { %176 = sbr.rel (%p173_p11) target bundleno = 426 (0x1aa), region = 32  ;;  %s179_s28 = scalar_lea.sflag (!%p173_p11), [#allocation4], %s1006_s22 }
  0x27   : > { %s696_s23 = smul.u32 (!%p173_p11), 12, %s1006_s22 }
  0x29   : > { %s1010_s29 = scalar_lea.vmem (!%p173_p11), [#allocation3], %s696_s23 }
  0x2b   : > { %858 = dma.done.wait (%p969_p8), %s179_s28, 192  }
  0x2c   : > { %860 = vsyncadd (%p969_p8), %s179_s28, 4294967104  ;;  %v890_v0 = vmov 0.0   ;;  %v360_v1 = vld [vmem:[%s1010_s29 + $0x8] sm:$0xf]  ;;  %v359_v2 = vld [vmem:[%s1010_s29] sm:$0xff]  ;;  %s891_s30 = smov 90  }
  0x2d   : > { %681 = vmatprep.subr.mxu1 %v890_v0  ;;  %479 = vmatprep.mubr.f32.mxu0 %v890_v0  ;;  %v363_v3 = vcombine.high %v359_v2, %v359_v2  ;;  %210 = vst [vmem:[#allocation2] sm:$0xf] %v359_v2  ;;  %v319_v4 = vld [vmem:[%s1010_s29 + $0x8] sm:$0xf]  ;;  %vm212_vm0 = vcmask 257024   ;;  %s892_s24 = smov 91   ;;  %v342_v7 = vcombine.low %v359_v2, %v359_v2 }
  0x2e   : > { %368 = vrot.lane.b32.xlu0 %v360_v1, %s891_s30  ;;  %364 = vrot.lane.b32.xlu1 %v359_v2, %s891_s30  ;;  %v206_v5 = vld [vmem:[%s1010_s29 + $0x8] sm:$0xf]  ;;  %s893_s4 = smov 92   ;;  %s894_s5 = smov 109   ;;  %vm899_vm1 = vmmov 0   ;;  %v900_v13 = vmov 0  }
  0x2f   : > { %211 = vst [vmem:[#allocation2 + $0x8] sm:$0xf] %v363_v3  ;;  %213 = vst.msk [vmem:[#allocation2 + $0x10] sm:$0xf] %vm212_vm0, %v206_v5  ;;  %v775_v6 = vld [vmem:[%s1010_s29 + $0x8] ss:$0 sps:$4 sm:$0xff]   ;;  %691 = vmatprep.mubr.msk.f32.mxu1 %vm899_vm1, %v890_v0  ;;  %772 = vset.pattern.permute.xlu0 %v900_v13 }
  0x30   : > { %v278_v8 = vld [vmem:[%s1010_s29 + $0x8] sm:$0xf]  ;;  %s895_s6 = smov 108   ;;  %s896_s7 = smov 126   ;;  %vm370_vm2 = vcmask 736256   ;;  %vm329_vm3 = vcmask 752640  }
  0x31   : > { %v776_v9 = vld [vmem:[%s1010_s29 + $0x8] ss:$0 sps:$4 sm:$0xff]   ;;  %s897_s8 = smov 110   ;;  %s898_s9 = smov 127   ;;  %vm405_vm4 = vcmask 1043456   ;;  %vm234_vm5 = vcmask 261124  }
  0x32   : > { %346 = vrot.lane.b32.xlu1 %v359_v2, %s892_s24  ;;  %327 = vrot.lane.b32.xlu0 %v319_v4, %s893_s4  ;;  %v237_v10 = vld [vmem:[%s1010_s29 + $0x8] sm:$0xf]  ;;  %vm350_vm6 = vcmask 744448   ;;  %vm288_vm7 = vcmask 891904   ;;  %vm309_vm8 = vcmask 883712   ;;  %vm247_vm9 = vcmask 1031168  }
  0x33   : > { %v777_v11 = vld [vmem:[%s1010_s29 + $0x8] ss:$0 sps:$4 sm:$0xff]   ;;  %vm268_vm10 = vcmask 900096   ;;  %vm226_vm11 = vcmask 1039360   ;;  %vm401_vm12 = vcmask 293888   ;;  %s697_s21 = smul.u32 24, %s1006_s22 }
  0x34   : > { %v778_v12 = vld [vmem:[%s1010_s29 + $0x8] ss:$0 sps:$4 sm:$0xff]   ;;  %vm558_vm13 = vcmask 261120   ;;  %s698_s23 = smul.u32 384, %s879_s15  ;;  %s901_s15 = smov [#allocation6]  }
  0x35   : > { %v395_v14 = vld [vmem:[%s1100_s2] sm:$0xff]  ;;  %s204_s28 = scalar_lea.vmem [#allocation6], %s697_s21 }
  0x36   : > { %366 = vrot.lane.b32.xlu0 %v363_v3, %s891_s30  ;;  %325 = vrot.lane.b32.xlu1 %v363_v3, %s893_s4  ;;  %v379_v4 = vld [vmem:[%s1099_s1] sm:$0xff]  ;;  %s577_s29 = sshll.u32 %s204_s28, 4  ;;  %s578_s29 = int_to_ptr.vmem [resolvable:$true] %s577_s29 }
  0x3a   : > { %348 = vrot.lane.b32.xlu0 %v775_v6, %s892_s24  ;;  %323 = vrot.lane.b32.xlu1 %v359_v2, %s893_s4  ;;  %s575_s4 = scalar_lea.hbm %s1101_s3, %s698_s23 }
  0x3e   : > { %344 = vrot.lane.b32.xlu0 %v342_v7, %s892_s24  ;;  %284 = vrot.lane.b32.xlu1 %v363_v3, %s894_s5 }
  0x42   : > { %286 = vrot.lane.b32.xlu0 %v278_v8, %s894_s5  ;;  %305 = vrot.lane.b32.xlu1 %v359_v2, %s895_s6 }
  0x46   : > { %307 = vrot.lane.b32.xlu0 %v776_v9, %s895_s6  ;;  %282 = vrot.lane.b32.xlu1 %v359_v2, %s894_s5  ;;  %s561_s5 = scalar_lea.sflag [#allocation5], %s1006_s22 }
  0x4a   : > { %303 = vrot.lane.b32.xlu0 %v342_v7, %s895_s6  ;;  %243 = vrot.lane.b32.xlu1 %v363_v3, %s896_s7  ;;  %s807_s6 = scalar_lea.vmem %s578_s29, 384 }
  0x4b   : > { %p808_p8 = scmp.ne.s32.totalorder %s578_s29, %s807_s6 }
  0x4d   : > { %p809_p11 = pnand %p808_p8, %p973_p9 }
  0x4e   : > { %245 = vrot.lane.b32.xlu0 %v237_v10, %s896_s7  ;;  %264 = vrot.lane.b32.xlu1 %v359_v2, %s897_s8 }
  0x4f   : > { %p810_p12 = pneg %p809_p11 }
  0x52   : > { %266 = vrot.lane.b32.xlu0 %v777_v11, %s897_s8  ;;  %241 = vrot.lane.b32.xlu1 %v359_v2, %s896_s7  ;;  %s811_s7 = sshll.u32 %s901_s15, 4  ;;  %s812_s7 = int_to_ptr.vmem [resolvable:$false] %s811_s7 }
  0x53   : > { %p814_p0 = scmp.lt.s32.totalorder %s578_s29, %s812_s7 }
  0x56   : > { %262 = vrot.lane.b32.xlu0 %v342_v7, %s897_s8  ;;  %222 = vrot.lane.b32.xlu1 %v359_v2, %s898_s9  ;;  %s813_s8 = scalar_lea.vmem %s812_s7, 768 }
  0x57   : > { %p815_p1 = scmp.lt.s32.totalorder %s813_s8, %s807_s6 }
  0x59   : > { %p816_p2 = por %p815_p1, %p814_p0 }
  0x5a   : > { %224 = vrot.lane.b32.xlu0 %v778_v12, %s898_s9  ;;  %220 = vrot.lane.b32.xlu1 %v342_v7, %s898_s9 }
  0x5b   : > { %p817_p3 = pnand %p816_p2, %p810_p12 }
  0x5e   : > { %398 = vperm.xlu0 %772, %v395_v14  }
  0xa0   : > { %v369_v15 = vpop.permute.xlu0 %368  ;;  %v365_v16 = vpop.permute.xlu1 %364 }
  0xa1   : > { %378 = vst.msk [vmem:[#allocation2 + $0x70] sm:$0xf] %vm212_vm0, %v369_v15 }
  0xa4   : > { %v347_v17 = vpop.permute.xlu1 %346  ;;  %v328_v18 = vpop.permute.xlu0 %327 }
  0xa5   : > { %337 = vst.msk [vmem:[#allocation2 + $0x58] sm:$0xf] %vm212_vm0, %v328_v18 }
  0xa8   : > { %v367_v19 = vpop.permute.xlu0 %366  ;;  %v326_v20 = vpop.permute.xlu1 %325  ;;  %v394_v21 = vld [vmem:[#allocation2 + $0x70] sm:$0xf] }
  0xa9   : > { %v371_v22 = vsel %vm370_vm2, %v365_v16, %v367_v19  ;;  %v372_v23 = vsel %vm370_vm2, %v367_v19, %v369_v15  ;;  %v331_v24 = vsel %vm329_vm3, %v326_v20, %v328_v18  ;;  %682 = vmatpush3.msk.msra.mxu1 %vm405_vm4, %v394_v21 }
  0xaa   : > { %376 = vst [vmem:[#allocation2 + $0x60] sm:$0xf] %v371_v22  ;;  %377 = vst [vmem:[#allocation2 + $0x68] sm:$0xf] %v372_v23  ;;  %683 = vmatprep.subr.mxu1 %v890_v0 }
  0xab   : > { %336 = vst [vmem:[#allocation2 + $0x50] sm:$0xf] %v331_v24 }
  0xac   : > { %v349_v25 = vpop.permute.xlu0 %348  ;;  %v324_v26 = vpop.permute.xlu1 %323 }
  0xad   : > { %v352_v27 = vsel %vm350_vm6, %v347_v17, %v349_v25  ;;  %358 = vst.msk [vmem:[#allocation2 + $0x58] sm:$0xf0] %vm234_vm5, %v349_v25  ;;  %v330_v28 = vsel %vm329_vm3, %v324_v26, %v326_v20 }
  0xae   : > { %357 = vst [vmem:[#allocation2 + $0x50] sm:$0xf0] %v352_v27  ;;  %335 = vst [vmem:[#allocation2 + $0x48] sm:$0xf] %v330_v28 }
  0xb0   : > { %v345_v29 = vpop.permute.xlu0 %344  ;;  %v285_v30 = vpop.permute.xlu1 %284 }
  0xb1   : > { %v351_v31 = vsel %vm350_vm6, %v345_v29, %v347_v17  ;;  %v393_v32 = vld [vmem:[#allocation2 + $0x68] sm:$0xf]  ;;  %v392_v33 = vld [vmem:[#allocation2 + $0x60] sm:$0xf] }
  0xb2   : > { %356 = vst [vmem:[#allocation2 + $0x48] sm:$0xf0] %v351_v31  ;;  %667 = vmatprep.subr.msk.mxu0 %vm405_vm4, %v393_v32 }
  0xb3   : > { %668 = vmatpush1.msk.msra.mxu0 %vm405_vm4, %v392_v33 }
  0xb4   : > { %v287_v34 = vpop.permute.xlu0 %286  ;;  %v306_v35 = vpop.permute.xlu1 %305  ;;  %v391_v36 = vld [vmem:[#allocation2 + $0x58] sm:$0xff] }
  0xb5   : > { %v290_v37 = vsel %vm288_vm7, %v285_v30, %v287_v34  ;;  %296 = vst.msk [vmem:[#allocation2 + $0x40] sm:$0xf] %vm212_vm0, %v287_v34  ;;  %684 = vmatpush3.msra.mxu1 %v391_v36  ;;  %v390_v38 = vld [vmem:[#allocation2 + $0x50] sm:$0xff] }
  0xb6   : > { %295 = vst [vmem:[#allocation2 + $0x38] sm:$0xf] %v290_v37  ;;  %439 = vmatprep.subr.mxu0 %v390_v38  ;;  %685 = vmatprep.subr.mxu1 %v890_v0 }
  0xb8   : > { %v308_v39 = vpop.permute.xlu0 %307  ;;  %v283_v40 = vpop.permute.xlu1 %282 }
  0xb9   : > { %v311_v41 = vsel %vm309_vm8, %v306_v35, %v308_v39  ;;  %317 = vst.msk [vmem:[#allocation2 + $0x40] sm:$0xf0] %vm234_vm5, %v308_v39  ;;  %v289_v42 = vsel %vm288_vm7, %v283_v40, %v285_v30  ;;  %v389_v43 = vld [vmem:[#allocation2 + $0x48] sm:$0xff] }
  0xba   : > { %316 = vst [vmem:[#allocation2 + $0x38] sm:$0xf0] %v311_v41  ;;  %294 = vst [vmem:[#allocation2 + $0x30] sm:$0xf] %v289_v42  ;;  %440 = vmatpush1.msra.mxu0 %v389_v43 }
  0xbc   : > { %v304_v44 = vpop.permute.xlu0 %303  ;;  %v244_v45 = vpop.permute.xlu1 %243 }
  0xbd   : > { %v310_v46 = vsel %vm309_vm8, %v304_v44, %v306_v35 }
  0xbe   : > { %315 = vst [vmem:[#allocation2 + $0x30] sm:$0xf0] %v310_v46 }
  0xc0   : > { %v246_v47 = vpop.permute.xlu0 %245  ;;  %v265_v48 = vpop.permute.xlu1 %264  ;;  %v388_v49 = vld [vmem:[#allocation2 + $0x40] sm:$0xff] }
  0xc1   : > { %v249_v50 = vsel %vm247_vm9, %v244_v45, %v246_v47  ;;  %255 = vst.msk [vmem:[#allocation2 + $0x28] sm:$0xf] %vm212_vm0, %v246_v47  ;;  %686 = vmatpush3.msra.mxu1 %v388_v49  ;;  %v387_v51 = vld [vmem:[#allocation2 + $0x38] sm:$0xff] }
  0xc2   : > { %254 = vst [vmem:[#allocation2 + $0x20] sm:$0xf] %v249_v50  ;;  %441 = vmatprep.subr.mxu0 %v387_v51  ;;  %687 = vmatprep.subr.mxu1 %v890_v0 }
  0xc4   : > { %v267_v52 = vpop.permute.xlu0 %266  ;;  %v242_v53 = vpop.permute.xlu1 %241 }
  0xc5   : > { %v270_v54 = vsel %vm268_vm10, %v265_v48, %v267_v52  ;;  %276 = vst.msk [vmem:[#allocation2 + $0x28] sm:$0xf0] %vm234_vm5, %v267_v52  ;;  %v248_v55 = vsel %vm247_vm9, %v242_v53, %v244_v45  ;;  %v386_v56 = vld [vmem:[#allocation2 + $0x30] sm:$0xff] }
  0xc6   : > { %275 = vst [vmem:[#allocation2 + $0x20] sm:$0xf0] %v270_v54  ;;  %253 = vst [vmem:[#allocation2 + $0x18] sm:$0xf] %v248_v55  ;;  %442 = vmatpush1.msra.mxu0 %v386_v56 }
  0xc8   : > { %v263_v57 = vpop.permute.xlu0 %262  ;;  %v223_v58 = vpop.permute.xlu1 %222 }
  0xc9   : > { %v269_v59 = vsel %vm268_vm10, %v263_v57, %v265_v48 }
  0xca   : > { %274 = vst [vmem:[#allocation2 + $0x18] sm:$0xf0] %v269_v59 }
  0xcc   : > { %v225_v60 = vpop.permute.xlu0 %224  ;;  %v221_v61 = vpop.permute.xlu1 %220  ;;  %v385_v62 = vld [vmem:[#allocation2 + $0x28] sm:$0xff] }
  0xcd   : > { %v228_v63 = vsel %vm226_vm11, %v223_v58, %v225_v60  ;;  %235 = vst.msk [vmem:[#allocation2 + $0x10] sm:$0xf0] %vm234_vm5, %v225_v60  ;;  %v227_v1 = vsel %vm226_vm11, %v221_v61, %v223_v58  ;;  %688 = vmatpush3.msra.mxu1 %v385_v62  ;;  %v384_v2 = vld [vmem:[#allocation2 + $0x20] sm:$0xff] }
  0xce   : > { %233 = vst [vmem:[#allocation2 + $0x8] sm:$0xf0] %v228_v63  ;;  %232 = vst [vmem:[#allocation2] sm:$0xf0] %v227_v1  ;;  %443 = vmatprep.subr.mxu0 %v384_v2  ;;  %689 = vmatprep.subr.mxu1 %v890_v0 }
  0xd1   : > { %v383_v3 = vld [vmem:[#allocation2 + $0x18] sm:$0xff] }
  0xd2   : > { %444 = vmatpush1.msra.mxu0 %v383_v3 }
  0xd4   : > { %v382_v5 = vld [vmem:[#allocation2 + $0x10] sm:$0xff] }
  0xd5   : > { %690 = vmatpush3.msra.mxu1 %v382_v5  ;;  %v381_v6 = vld [vmem:[#allocation2 + $0x8] sm:$0xff]  ;;  %v380_v7 = vld [vmem:[#allocation2] sm:$0xff] }
  0xd6   : > { %445 = vmatprep.subr.mxu0 %v381_v6  ;;  %692 = vmatmul.mubr.msk.f32.vlgmr.msra.gmra.mxu1 %vm401_vm12, %v379_v4 }
  0xd7   : > { %446 = vmatpush1.msra.mxu0 %v380_v7 }
  0xd8   : > { %669 = vmatmul.mubr.msk.f32.vlgmr.msra.gmra.mxu0 %vm401_vm12, %v379_v4 }
  0xd9   : > { %v399_v8 = vpop.permute.xlu0 %398 }
 0x196   : > { %v552_v9 = vpop.f32.mrf.mxu1 }
 0x197   : > { %v553_v0 = vadd.f32 %v552_v9, %v399_v8 }
 0x198   : > { %v481_v10 = vpop.f32.mrf.mxu0  ;;  %v693_v11 = vpop.f32.mrf.mxu1 }
 0x199   : > { %v482_v12 = vadd.f32 %v481_v10, %v399_v8  ;;  %559 = vst.msk [vmem:[%s204_s28 + $0x10] sm:$0xff] %vm558_vm13, %v553_v0 }
 0x19a   : > { %v483_v13 = vpop.f32.mrf.mxu0 }
 0x19b   : > { %556 = vst [vmem:[%s204_s28] sm:$0xff] %v482_v12  ;;  %v484_v14 = vadd.f32 %v483_v13, %v399_v8 }
 0x19d   : > { %557 = vst [vmem:[%s204_s28 + $0x8] sm:$0xff] %v484_v14 }
 0x19e   : > { %820 = shalt.err (!%p817_p3)
}
 0x19f   : > { %s821_s9 = scalar_lea.hbm %s575_s4, 384  ;;  %s825_s11 = scalar_lea.hbm %s1101_s3, 768 }
 0x1a0   : > { %p822_p5 = scmp.ne.s32.totalorder %s575_s4, %s821_s9  ;;  %p826_p7 = scmp.lt.s32.totalorder %s575_s4, %s1101_s3 }
 0x1a1   : > { %p827_p10 = scmp.lt.s32.totalorder %s825_s11, %s821_s9 }
 0x1a2   : > { %p823_p6 = pnand %p822_p5, %p973_p9 }
 0x1a3   : > { %p828_p13 = por %p827_p10, %p826_p7 }
 0x1a4   : > { %p824_p4 = pneg %p823_p6 }
 0x1a6   : > { %p829_p8 = pnand %p828_p13, %p824_p4 }
 0x1a8   : > { %832 = shalt.err (!%p829_p8)
}
 0x1a9   : > { %701 = dma.vmem_to_hbm [thread:$0]  (%p973_p9), %s578_s29, 384, %s575_s4, %s561_s5  }
 0x1aa PF: > { %s589_s21 = sand.u32 1, %s867_s12   ;;  %p1107_p11 = scmp.ne.s32.totalorder %s1105_s27, 0 }
 0x1ab   : > { %p1108_p12 = scmp.ge.s32.totalorder %s887_s17, 2  ;;  %s590_s23 = scalar_lea.sflag [#allocation5], %s589_s21 }
 0x1ad   : > { %p708_p0 = pnand %p1108_p12, %p1107_p11 }
 0x1af   : > { %p709_p1 = pneg %p708_p0 }
 0x1b1   : > { %862 = dma.done.wait (%p709_p1), %s590_s23, 384  }
 0x1b2   : > { %864 = vsyncadd (%p709_p1), %s590_s23, 4294966912  ;;  %s19_s17 = sadd.s32 1, %s887_s17   ;;  %s1109_s12 = smov %s871_s13 }
 0x1b3   : > { %p16_p2 = scmp.ge.s32.totalorder %s19_s17, 4   ;;  %s1110_s13 = smov %s875_s14 }
 0x1b4   : > { %s1111_s14 = smov %s978_s26  ;;  %s1112_s15 = smov %s883_s16 }
 0x1b5   : > { %s1113_s16 = smov %s1115_s20  ;;  %18 = sbr.rel (!%p16_p2) target bundleno = 6 (0x6), region = 77 }
 0x1ba   :  { %595 = vsyncpa [#allocation4], 1 }
 0x1bb   :  { %597 = vsyncpa [#allocation4 + $0x1], 1 }
 0x1bc   :  { %598 = vsyncpa [#allocation5], 1 }
 0x1bd   :  { %600 = vsyncpa [#allocation5 + $0x1], 1 }

</bundles_post_ra>
